<compile_context>
chip_gen: v7x
topology: tpu7x:2x2x1
jax: 0.10.0
libtpu: 0.0.40
codegen_flags: <defaults>
</compile_context>

<pallas_src>
import functools

import jax
import jax.numpy as jnp
from jax.experimental import pallas as pl
from jax.experimental.pallas import tpu as pltpu


def _gate_kernel(x_ref, w1_ref, b1_ref, w2_ref, b2_ref, s_ref, acc_ref, *, inv_hw):
    # x_ref : (N, C, THW)  current spatial tile, native dtype
    # w1_ref: (C, Cr)      conv1 weight, pre-transposed (1x1 conv == matmul)
    # b1_ref: (1, Cr)
    # w2_ref: (Cr, C)      conv2 weight, pre-transposed
    # b2_ref: (1, C)
    # s_ref : (N, C, 1)    gate output (f32), resident across the HW grid axis
    # acc_ref:(N, C)       f32 pooled-sum accumulator (VMEM scratch)
    k = pl.program_id(0)

    @pl.when(k == 0)
    def _():
        acc_ref[...] = jnp.zeros_like(acc_ref)

    # Partial spatial sum in f32 (lane-axis reduce).
    acc_ref[...] += jnp.sum(x_ref[...].astype(jnp.float32), axis=-1)

    @pl.when(k == pl.num_programs(0) - 1)
    def _():
        pooled = acc_ref[...] * inv_hw                                   # (N, C)
        # conv1 (1x1) + ReLU -- batched across N (real MXU rows).
        h = jnp.dot(pooled, w1_ref[...],
                    preferred_element_type=jnp.float32) + b1_ref[...]    # (N, Cr)
        h = jnp.maximum(h, 0.0)
        # conv2 (1x1) + hard-sigmoid  ( relu6(x + 3) / 6 )
        s = jnp.dot(h, w2_ref[...],
                    preferred_element_type=jnp.float32) + b2_ref[...]    # (N, C)
        s = jnp.clip(s + 3.0, 0.0, 6.0) * (1.0 / 6.0)
        s_ref[...] = s[:, :, None]


def _scale_kernel(x_ref, s_ref, o_ref):
    # x_ref: (N, C, THW) native dtype; s_ref: (N, C, 1) f32; o_ref: (N, C, THW)
    x = x_ref[...].astype(jnp.float32)
    o_ref[...] = (x * s_ref[...]).astype(o_ref.dtype)


def _pick_hw_tile(hw, n, c, itemsize):
    """Largest multiple-of-128 divisor of HW within a v7x-safe VMEM budget."""
    if hw % 128 != 0:
        return hw  # whole spatial extent as one block (equals full dim -> legal)
    budget = 4 * 1024 * 1024                       # ~4 MiB per block; with
    cap = max(128, budget // max(1, n * c * itemsize))  # 2x dbl-buf in + out this
    cap = min(cap, 2048, hw)                       # stays well under v7x 64 MiB
    thw = 128
    t = 128
    while t <= cap:
        if hw % t == 0:
            thw = t
        t += 128
    # Prefer >=2 grid steps so v7x's second TensorCore gets work.
    if thw == hw and hw >= 256 and (hw // 2) % 128 == 0:
        thw = hw // 2
    return thw


def se_module_pallas(x_nchw, w1, b1, w2, b2):
    """x_nchw: (N, C, H, W); w1: (Cr, C, 1, 1); b1: (Cr,); w2: (C, Cr, 1, 1); b2: (C,)."""
    N, C, H, W = x_nchw.shape
    Cr = w1.shape[0]
    HW = H * W
    dtype = x_nchw.dtype
    itemsize = jnp.dtype(dtype).itemsize

    # Free view: NCHW -> (N, C, HW); no transpose, no extra HBM traffic.
    x = x_nchw.reshape(N, C, HW)
    # Squeeze 1x1 conv weights into matmul form (tiny, keep f32).
    w1t = jnp.transpose(w1.reshape(Cr, C), (1, 0)).astype(jnp.float32)   # (C, Cr)
    w2t = jnp.transpose(w2.reshape(C, Cr), (1, 0)).astype(jnp.float32)   # (Cr, C)
    b1r = b1.reshape(1, Cr).astype(jnp.float32)
    b2r = b2.reshape(1, C).astype(jnp.float32)

    thw = _pick_hw_tile(HW, N, C, itemsize)
    n_hw = HW // thw

    # ---- Kernel 1: pool + gate -> s: (N, C, 1) in f32 -----------------------
    gate = pl.pallas_call(
        functools.partial(_gate_kernel, inv_hw=1.0 / HW),
        out_shape=jax.ShapeDtypeStruct((N, C, 1), jnp.float32),
        grid_spec=pltpu.PrefetchScalarGridSpec(
            num_scalar_prefetch=0,
            grid=(n_hw,),
            in_specs=[
                pl.BlockSpec((N, C, thw), lambda k: (0, 0, k)),
                pl.BlockSpec((C, Cr), lambda k: (0, 0)),
                pl.BlockSpec((1, Cr), lambda k: (0, 0)),
                pl.BlockSpec((Cr, C), lambda k: (0, 0)),
                pl.BlockSpec((1, C), lambda k: (0, 0)),
            ],
            out_specs=pl.BlockSpec((N, C, 1), lambda k: (0, 0, 0)),
            scratch_shapes=[pltpu.VMEM((N, C), jnp.float32)],
        ),
        compiler_params=pltpu.CompilerParams(
            dimension_semantics=("arbitrary",)),
        cost_estimate=pl.CostEstimate(
            flops=N * HW * C + 4 * N * C * Cr,
            transcendentals=0,
            bytes_accessed=N * HW * C * itemsize + N * C * 4),
    )(x, w1t, b1r, w2t, b2r)

    # ---- Kernel 2: streaming scale pass  y = x * s --------------------------
    out = pl.pallas_call(
        _scale_kernel,
        out_shape=jax.ShapeDtypeStruct((N, C, HW), dtype),
        grid_spec=pltpu.PrefetchScalarGridSpec(
            num_scalar_prefetch=0,
            grid=(n_hw,),
            in_specs=[
                pl.BlockSpec((N, C, thw), lambda k: (0, 0, k)),
                pl.BlockSpec((N, C, 1), lambda k: (0, 0, 0)),  # resident gate
            ],
            out_specs=pl.BlockSpec((N, C, thw), lambda k: (0, 0, k)),
        ),
        compiler_params=pltpu.CompilerParams(
            dimension_semantics=("parallel",)),
        cost_estimate=pl.CostEstimate(
            flops=N * HW * C,
            transcendentals=0,
            bytes_accessed=2 * N * HW * C * itemsize),
    )(x, gate)

    # Free view back to NCHW.
    return out.reshape(N, C, H, W)


def _reference(x, w1, b1, w2, b2):
    # Pure-JAX reference mirroring the torch forward (NCHW).
    pooled = jnp.mean(x, axis=(2, 3), keepdims=True)                     # (N,C,1,1)
    h = jnp.einsum("oc,nchw->nohw", w1.reshape(w1.shape[0], -1), pooled) \
        + b1.reshape(1, -1, 1, 1)
    h = jnp.maximum(h, 0.0)
    s = jnp.einsum("oc,nchw->nohw", w2.reshape(w2.shape[0], -1), h) \
        + b2.reshape(1, -1, 1, 1)
    s = jnp.clip(s + 3.0, 0.0, 6.0) / 6.0
    return x * s


if __name__ == "__main__":
    key = jax.random.PRNGKey(0)
    N, C, H, W = 2, 32, 16, 16
    reduction = 4
    Cr = C // reduction

    k_x, k_w1, k_b1, k_w2, k_b2 = jax.random.split(key, 5)
    x = jax.random.normal(k_x, (N, C, H, W), dtype=jnp.float32)
    # Deterministic synthetic parameters (Conv2d 1x1 shapes from __init__).
    w1 = jax.random.normal(k_w1, (Cr, C, 1, 1), dtype=jnp.float32) * 0.5
    b1 = jax.random.normal(k_b1, (Cr,), dtype=jnp.float32) * 0.1
    w2 = jax.random.normal(k_w2, (C, Cr, 1, 1), dtype=jnp.float32) * 0.5
    b2 = jax.random.normal(k_b2, (C,), dtype=jnp.float32) * 0.1

    y = se_module_pallas(x, w1, b1, w2, b2)
    jax.block_until_ready(y)

    y_ref = _reference(x, w1, b1, w2, b2)
    assert y.shape == (N, C, H, W)
    assert jnp.allclose(y, y_ref, atol=1e-4, rtol=1e-4), \
        float(jnp.max(jnp.abs(y - y_ref)))

    print("KERNEL_OK")
</pallas_src>

<mosaic_0001>
module attributes {stable_mosaic.version = 11 : i64} {
  func.func @_gate_kernel(%arg0: i32, %arg1: memref<2x32x128xf32, #tpu.memory_space<vmem>>, %arg2: memref<32x8xf32, #tpu.memory_space<vmem>>, %arg3: memref<1x8xf32, #tpu.memory_space<vmem>>, %arg4: memref<8x32xf32, #tpu.memory_space<vmem>>, %arg5: memref<1x32xf32, #tpu.memory_space<vmem>>, %arg6: memref<2x32x1xf32, #tpu.memory_space<vmem>>, %arg7: memref<2x32xf32, #tpu.memory_space<vmem>>) attributes {dimension_semantics = [#tpu.dimension_semantics<arbitrary>], iteration_bounds = array<i64: 2>, scalar_prefetch = 0 : i64, scratch_operands = 1 : i64, tpu.core_type = #tpu.core_type<tc>, window_params = [{transform_indices = @transform_0, window_bounds = array<i64: 2, 32, 128>}, {pipeline_mode = #tpu.pipeline_mode<synchronous>, transform_indices = @transform_1, window_bounds = array<i64: 32, 8>}, {pipeline_mode = #tpu.pipeline_mode<synchronous>, transform_indices = @transform_2, window_bounds = array<i64: 1, 8>}, {pipeline_mode = #tpu.pipeline_mode<synchronous>, transform_indices = @transform_3, window_bounds = array<i64: 8, 32>}, {pipeline_mode = #tpu.pipeline_mode<synchronous>, transform_indices = @transform_4, window_bounds = array<i64: 1, 32>}, {pipeline_mode = #tpu.pipeline_mode<synchronous>, transform_indices = @transform_5, window_bounds = array<i64: 2, 32, 1>}]} {
    %c0_i32 = arith.constant 0 : i32
    %0 = arith.cmpi eq, %arg0, %c0_i32 : i32
    %1 = arith.extui %0 : i1 to i32
    %c0_i32_0 = arith.constant 0 : i32
    %2 = arith.cmpi ne, %1, %c0_i32_0 : i32
    scf.if %2 {
      %cst_8 = arith.constant 0.000000e+00 : f32
      %11 = vector.broadcast %cst_8 : f32 to vector<2x32xf32>
      %c0_9 = arith.constant 0 : index
      %c0_10 = arith.constant 0 : index
      %12 = vector.load %arg7[%c0_9, %c0_10] : memref<2x32xf32, #tpu.memory_space<vmem>>, vector<2x32xf32>
      tpu.vector_store %arg7[%c0_9, %c0_10], %11 {strides = array<i32>} : memref<2x32xf32, #tpu.memory_space<vmem>>, vector<2x32xf32>,
    } else {
    }
    %c0 = arith.constant 0 : index
    %c0_1 = arith.constant 0 : index
    %3 = vector.load %arg7[%c0, %c0_1] : memref<2x32xf32, #tpu.memory_space<vmem>>, vector<2x32xf32>
    %c0_2 = arith.constant 0 : index
    %c0_3 = arith.constant 0 : index
    %c0_4 = arith.constant 0 : index
    %4 = vector.load %arg1[%c0_2, %c0_3, %c0_4] : memref<2x32x128xf32, #tpu.memory_space<vmem>>, vector<2x32x128xf32>
    %cst = arith.constant dense<0.000000e+00> : vector<2x32xf32>
    %5 = vector.multi_reduction <add>, %4, %cst [2] : vector<2x32x128xf32> to vector<2x32xf32>
    %6 = arith.addf %3, %5 : vector<2x32xf32>
    %c0_5 = arith.constant 0 : index
    %c0_6 = arith.constant 0 : index
    %7 = vector.load %arg7[%c0_5, %c0_6] : memref<2x32xf32, #tpu.memory_space<vmem>>, vector<2x32xf32>
    tpu.vector_store %arg7[%c0_5, %c0_6], %6 {strides = array<i32>} : memref<2x32xf32, #tpu.memory_space<vmem>>, vector<2x32xf32>,
    %c1_i32 = arith.constant 1 : i32
    %8 = arith.cmpi eq, %arg0, %c1_i32 : i32
    %9 = arith.extui %8 : i1 to i32
    %c0_i32_7 = arith.constant 0 : i32
    %10 = arith.cmpi ne, %9, %c0_i32_7 : i32
    scf.if %10 {
      %c0_8 = arith.constant 0 : index
      %c0_9 = arith.constant 0 : index
      %11 = vector.load %arg7[%c0_8, %c0_9] : memref<2x32xf32, #tpu.memory_space<vmem>>, vector<2x32xf32>
      %cst_10 = arith.constant 3.906250e-03 : f32
      %12 = vector.broadcast %cst_10 : f32 to vector<2x32xf32>
      %13 = arith.mulf %11, %12 : vector<2x32xf32>
      %c0_11 = arith.constant 0 : index
      %c0_12 = arith.constant 0 : index
      %14 = vector.load %arg2[%c0_11, %c0_12] : memref<32x8xf32, #tpu.memory_space<vmem>>, vector<32x8xf32>
      %cst_13 = arith.constant dense<0.000000e+00> : vector<2x8xf32>
      %15 = tpu.matmul %13, %14, %cst_13 {dimension_numbers = #tpu.dot_dimension_numbers<[1], [0], [0], [1], [0, 0, 1, 1], [], []>} : vector<2x32xf32>, vector<32x8xf32>, vector<2x8xf32> -> vector<2x8xf32>
      %c0_14 = arith.constant 0 : index
      %c0_15 = arith.constant 0 : index
      %16 = vector.load %arg3[%c0_14, %c0_15] : memref<1x8xf32, #tpu.memory_space<vmem>>, vector<1x8xf32>
      %17 = vector.broadcast %16 : vector<1x8xf32> to vector<2x8xf32>
      %18 = arith.addf %15, %17 : vector<2x8xf32>
      %cst_16 = arith.constant 0.000000e+00 : f32
      %19 = vector.broadcast %cst_16 : f32 to vector<2x8xf32>
      %20 = arith.maximumf %18, %19 : vector<2x8xf32>
      %c0_17 = arith.constant 0 : index
      %c0_18 = arith.constant 0 : index
      %21 = vector.load %arg4[%c0_17, %c0_18] : memref<8x32xf32, #tpu.memory_space<vmem>>, vector<8x32xf32>
      %cst_19 = arith.constant dense<0.000000e+00> : vector<2x32xf32>
      %22 = tpu.matmul %20, %21, %cst_19 {dimension_numbers = #tpu.dot_dimension_numbers<[1], [0], [0], [1], [0, 0, 1, 1], [], []>} : vector<2x8xf32>, vector<8x32xf32>, vector<2x32xf32> -> vector<2x32xf32>
      %c0_20 = arith.constant 0 : index
      %c0_21 = arith.constant 0 : index
      %23 = vector.load %arg5[%c0_20, %c0_21] : memref<1x32xf32, #tpu.memory_space<vmem>>, vector<1x32xf32>
      %24 = vector.broadcast %23 : vector<1x32xf32> to vector<2x32xf32>
      %25 = arith.addf %22, %24 : vector<2x32xf32>
      %cst_22 = arith.constant 3.000000e+00 : f32
      %26 = vector.broadcast %cst_22 : f32 to vector<2x32xf32>
      %27 = arith.addf %25, %26 : vector<2x32xf32>
      %cst_23 = arith.constant 0.000000e+00 : f32
      %cst_24 = arith.constant 6.000000e+00 : f32
      %28 = vector.broadcast %cst_23 : f32 to vector<2x32xf32>
      %29 = arith.maximumf %28, %27 : vector<2x32xf32>
      %30 = vector.broadcast %cst_24 : f32 to vector<2x32xf32>
      %31 = arith.minimumf %30, %29 : vector<2x32xf32>
      %cst_25 = arith.constant 0.166666672 : f32
      %32 = vector.broadcast %cst_25 : f32 to vector<2x32xf32>
      %33 = arith.mulf %31, %32 : vector<2x32xf32>
      %34 = vector.shape_cast %33 : vector<2x32xf32> to vector<2x32x1xf32>
      %c0_26 = arith.constant 0 : index
      %c0_27 = arith.constant 0 : index
      %c0_28 = arith.constant 0 : index
      %35 = vector.load %arg6[%c0_26, %c0_27, %c0_28] : memref<2x32x1xf32, #tpu.memory_space<vmem>>, vector<2x32x1xf32>
      tpu.vector_store %arg6[%c0_26, %c0_27, %c0_28], %34 {strides = array<i32>} : memref<2x32x1xf32, #tpu.memory_space<vmem>>, vector<2x32x1xf32>,
    } else {
    }
    return
  }
  func.func @transform_0(%arg0: i32) -> (i32, i32, i32) {
    %c0_i32 = arith.constant 0 : i32
    %c0_i32_0 = arith.constant 0 : i32
    %c0_i32_1 = arith.constant 0 : i32
    return %c0_i32, %c0_i32_0, %arg0 : i32, i32, i32
  }
  func.func @transform_1(%arg0: i32) -> (i32, i32) {
    %c0_i32 = arith.constant 0 : i32
    %c0_i32_0 = arith.constant 0 : i32
    %c0_i32_1 = arith.constant 0 : i32
    return %c0_i32, %c0_i32_0 : i32, i32
  }
  func.func @transform_2(%arg0: i32) -> (i32, i32) {
    %c0_i32 = arith.constant 0 : i32
    %c0_i32_0 = arith.constant 0 : i32
    %c0_i32_1 = arith.constant 0 : i32
    return %c0_i32, %c0_i32_0 : i32, i32
  }
  func.func @transform_3(%arg0: i32) -> (i32, i32) {
    %c0_i32 = arith.constant 0 : i32
    %c0_i32_0 = arith.constant 0 : i32
    %c0_i32_1 = arith.constant 0 : i32
    return %c0_i32, %c0_i32_0 : i32, i32
  }
  func.func @transform_4(%arg0: i32) -> (i32, i32) {
    %c0_i32 = arith.constant 0 : i32
    %c0_i32_0 = arith.constant 0 : i32
    %c0_i32_1 = arith.constant 0 : i32
    return %c0_i32, %c0_i32_0 : i32, i32
  }
  func.func @transform_5(%arg0: i32) -> (i32, i32, i32) {
    %c0_i32 = arith.constant 0 : i32
    %c0_i32_0 = arith.constant 0 : i32
    %c0_i32_1 = arith.constant 0 : i32
    %c0_i32_2 = arith.constant 0 : i32
    return %c0_i32, %c0_i32_0, %c0_i32_1 : i32, i32, i32
  }
}

</mosaic_0001>

<bundles_post_ra>
// kernel: tpu_custom_call.1
= control target key start
LH: loop header
LB: loop body
LE: loop exit
PB: predicated region body
PF: predicated region fallthrough
CT: control target
= control target key end

     0   :  { %10 = vsyncpa [#allocation4], 0  ;;  %s942_s0 = inlined_call_operand.hbm [shape: f32[2,32,256], index: 0, kind: input, shape index: {}]   ;;  %s943_s1 = inlined_call_operand.vmem [shape: f32[32,8], index: 1, kind: input, shape index: {}]   ;;  %s944_s2 = inlined_call_operand.vmem [shape: f32[1,8], index: 2, kind: input, shape index: {}]   ;;  %s945_s3 = inlined_call_operand.vmem [shape: f32[8,32], index: 3, kind: input, shape index: {}]   ;;  %s946_s4 = inlined_call_operand.vmem [shape: f32[1,32], index: 4, kind: input, shape index: {}]   ;;  %s947_s5 = inlined_call_operand.vmem [shape: f32[2,32,1], index: 5, kind: output, shape index: {}]  }
   0x1   :  { %12 = vsyncpa [#allocation4 + $0x1], 0  ;;  %s778_s18 = smov 0   ;;  %s780_s19 = smov 0  }
   0x2   :  { %s782_s20 = smov 0   ;;  %s784_s21 = smov 0  }
   0x3 LB: > { %s797_s22 = sadd.s32 4294967295, %s738_s21   ;;  %s800_s23 = sadd.s32 1, %s738_s21   ;;  %s738_s21 = sphi %s784_s21, %s953_s21   ;;  %s734_s20 = sphi %s782_s20, %s952_s20   ;;  %s730_s19 = sphi %s780_s19, %s951_s19   ;;  %s726_s18 = sphi %s778_s18, %s950_s18  }
   0x4   : > { %s22_s24 = ssub.s32 %s738_s21, %s800_s23  ;;  %s25_s25 = sadd.s32 1, %s734_s20 }
   0x5   : > { %p23_p0 = scmp.eq.s32.totalorder %s22_s24, 0  ;;  %p32_p1 = scmp.ne.s32.totalorder %s734_s20, %s730_s19 }
   0x6   : > { %p33_p2 = scmp.eq.s32.totalorder %s738_s21, 0  ;;  %p38_p3 = scmp.ne.s32.totalorder %s730_s19, %s726_s18 }
   0x7   : > { %s810_s26 = scalar_select %p23_p0, %s734_s20, %s25_s25  }
   0x8   : > { %p34_p4 = por %p33_p2, %p32_p1  ;;  %p39_p5 = scmp.eq.s32.totalorder %s797_s22, 0 }
   0x9   : > { %p634_p6 = scmp.lt.s32.totalorder %s738_s21, 2  ;;  %s179_s28 = sand.u32 1, %s734_s20  }
   0xa   : > { %p814_p7 = por %p39_p5, %p38_p3  ;;  %s587_s29 = sshll.u32 %s179_s28, 6 }
   0xb   : > { %s588_s30 = sshll.u32 %s738_s21, 7  ;;  %s183_s9 = scalar_lea.vmem [#allocation3], %s587_s29 }
   0xc   : > { %s823_s8 = scalar_lea.hbm %s942_s0, %s588_s30  ;;  %s189_s10 = sshll.u32 %s183_s9, 4  ;;  %s825_s10 = int_to_ptr.vmem [resolvable:$true] %s189_s10 }
   0xd   : > { %p827_p8 = pnand %p634_p6, %p34_p4  ;;  %s831_s12 = scalar_lea.sflag [#allocation4], %s179_s28 }
   0xe   : > { %s674_s13 = scalar_lea.hbm %s823_s8, 1024  ;;  %s679_s16 = scalar_lea.hbm %s942_s0, 2048 }
   0xf   : > { %p675_p9 = scmp.ne.s32.totalorder %s823_s8, %s674_s13  ;;  %p676_p10 = pneg %p827_p8 }
  0x10   : > { %p680_p13 = scmp.lt.u32.totalorder %s823_s8, %s942_s0  ;;  %p681_p0 = scmp.lt.u32.totalorder %s679_s16, %s674_s13 }
  0x11   : > { %p677_p11 = pnand %p676_p10, %p675_p9  ;;  %p683_p2 = scmp.lt.u32.totalorder %s674_s13, %s823_s8 }
  0x12   : > { %p682_p1 = por %p681_p0, %p680_p13 }
  0x13   : > { %p678_p12 = pneg %p677_p11 }
  0x14   : > { %p684_p3 = por %p683_p2, %p682_p1 }
  0x16   : > { %p685_p4 = pnand %p684_p3, %p678_p12 }
  0x18   : > { %688 = shalt.err (!%p685_p4)
}
  0x19   : > { %s689_s24 = scalar_lea.vmem %s825_s10, 1024  ;;  %s740_s25 = smov [#allocation3]  }
  0x1a   : > { %p690_p5 = scmp.ne.s32.totalorder %s825_s10, %s689_s24  ;;  %s694_s28 = sshll.u32 %s740_s25, 4  ;;  %s695_s28 = int_to_ptr.vmem [resolvable:$false] %s694_s28 }
  0x1b   : > { %s696_s29 = scalar_lea.vmem %s695_s28, 2048  ;;  %p697_p11 = scmp.lt.s32.totalorder %s825_s10, %s695_s28 }
  0x1c   : > { %p692_p6 = pnand %p690_p5, %p676_p10  ;;  %p698_p13 = scmp.lt.s32.totalorder %s696_s29, %s689_s24 }
  0x1e   : > { %p693_p9 = pneg %p692_p6  ;;  %p699_p0 = por %p698_p13, %p697_p11 }
  0x20   : > { %p700_p1 = pnand %p699_p0, %p693_p9 }
  0x22   : > { %703 = shalt.err (!%p700_p1)
}
  0x23   : > { %s741_s30 = smov 256   ;;  %s742_s6 = smov 128  }
  0x24   : > { %s743_s7 = smov 8   ;;  %p589_p10 = scmp.ge.s32.totalorder %s738_s21, 1 }
  0x25   : > { %633 = dma.hbm_to_vmem [thread:$0]  (!%p827_p8), %s823_s8, 1024, %s825_s10, %s831_s12, %s741_s30, %s742_s6, %s743_s7  }
  0x26   : > { %p197_p12 = scmp.lt.s32.totalorder %s738_s21, 3 }
  0x28   : > { %p198_p2 = pnand %p589_p10, %p197_p12 }
  0x29   : > { %s203_s9 = sand.u32 (!%p198_p2), 1, %s730_s19  }
  0x2a   : > { %201 = sbr.rel (%p198_p2) target bundleno = 799 (0x31f), region = 40  ;;  %s590_s13 = sshll.u32 (!%p198_p2), %s203_s9, 6 }
  0x2b   : > { %s204_s14 = scalar_lea.sflag (!%p198_p2), [#allocation4], %s203_s9  ;;  %s207_s15 = scalar_lea.vmem (!%p198_p2), [#allocation3], %s590_s13 }
  0x31   : > { %721 = dma.done.wait (%p814_p7), %s204_s14, 1024  }
  0x32   : > { %723 = vsyncadd (%p814_p7), %s204_s14, 4294966272  ;;  %p591_p3 = scmp.ne.s32.totalorder %s797_s22, 0 }
  0x33   : > { %vm233_vm0 = vcmask (!%p591_p3), 254976   ;;  %v744_v0 = vmov (!%p591_p3), 0.0  }
  0x34   : > { %232 = sbr.rel (%p591_p3) target bundleno = 59 (0x3b), region = 48  ;;  %234 = vst.msk [vmem:[#allocation2] sm:$0x3] (!%p591_p3), %vm233_vm0, %v744_v0 }
  0x3b PF: > { %v240_v1 = vld [vmem:[%s207_s15 + $0x20] sm:$0xff]  ;;  %v241_v3 = vld [vmem:[%s207_s15 + $0x28] sm:$0xff]  ;;  %v242_v5 = vld [vmem:[%s207_s15 + $0x30] sm:$0xff]  ;;  %v268_v9 = vlaneseq  ;;  %vm279_vm1 = vcmask 130112   ;;  %vm286_vm2 = vcmask 195712   ;;  %vm293_vm3 = vcmask 261312  }
  0x3c   : > { %v236_v2 = vld [vmem:[%s207_s15] sm:$0xff]  ;;  %252 = vadd.xlane.f32.xlu1 %v240_v1  ;;  %v237_v4 = vld [vmem:[%s207_s15 + $0x8] sm:$0xff]  ;;  %v238_v6 = vld [vmem:[%s207_s15 + $0x10] sm:$0xff]  ;;  %vm314_vm4 = vcmask 1041409   ;;  %vm318_vm5 = vcmask 254976   ;;  %p592_p7 = scmp.ne.s32.totalorder %s797_s22, 1 }
  0x3d   : > { %244 = vadd.xlane.f32.xlu0 %v236_v2  ;;  %v243_v7 = vld [vmem:[%s207_s15 + $0x38] sm:$0xff]  ;;  %v269_v10 = vand.u32 127, %v268_v9  ;;  %v867_v15 = vshrl.u32 %v268_v9, 7  ;;  %v327_v45 = vld [vmem:[%s943_s1 + $0x8] sm:$0xff] (!%p592_p7)  ;;  %v328_v46 = vld [vmem:[%s943_s1 + $0x10] sm:$0xff] (!%p592_p7)  ;;  %v745_v47 = vmov (!%p592_p7), 0.0|0.0  }
  0x3e   : > { %v239_v8 = vld [vmem:[%s207_s15 + $0x18] sm:$0xff]  ;;  %622 = vmatprep.subr.bf16.mxu0 (!%p592_p7), %v745_v47  ;;  %vm746_vm6 = vmmov (!%p592_p7), 0   ;;  %v747_v50 = vmov (!%p592_p7), 0.0   ;;  %vm337_vm7 = vcmask (!%p592_p7), 261120   ;;  %vm420_vm8 = vcmask (!%p592_p7), 64512  }
  0x3f   : > { %v274_v13 = vadd.s32 4294967288, %v269_v10  ;;  %v281_v14 = vadd.s32 4294967280, %v269_v10  ;;  %v288_v19 = vadd.s32 4294967272, %v269_v10  ;;  %v272_v21 = vsub.s32 %v269_v10, %v867_v15  ;;  %v235_v39 = vld [vmem:[#allocation2] sm:$0x3]  ;;  %v329_v49 = vld [vmem:[%s943_s1 + $0x18] sm:$0xff] (!%p592_p7)  ;;  %614 = vmatprep.mubr.msk.f32.mxu0 (!%p592_p7), %vm746_vm6, %v747_v50  ;;  %617 = vmatprep.subr.mxu1 (!%p592_p7), %v747_v50 }
  0x40   : > { %254 = vadd.xlane.f32.xlu1 %v241_v3  ;;  %v326_v44 = vld [vmem:[%s943_s1] sm:$0xff] (!%p592_p7)  ;;  %619 = vmatprep.mubr.msk.f32.mxu1 (!%p592_p7), %vm746_vm6, %v747_v50  ;;  %v626_v51 = vpack.c.bf16 (!%p592_p7), %v329_v49, %v328_v46  ;;  %v500_v3 = vsub.s32 (!%p592_p7), 0, %v867_v15  ;;  %vm536_vm9 = vcmask (!%p592_p7), 7168  }
  0x41   : > { %246 = vadd.xlane.f32.xlu0 %v237_v4  ;;  %v277_v18 = vsub.s32 %v274_v13, %v867_v15  ;;  %v284_v20 = vsub.s32 %v281_v14, %v867_v15  ;;  %v291_v26 = vsub.s32 %v288_v19, %v867_v15  ;;  %v623_v48 = vpack.c.bf16 (!%p592_p7), %v327_v45, %v326_v44  ;;  %v412_v54 = vld [vmem:[%s945_s3] sm:$0xff] (!%p592_p7) }
  0x42   : > { %618 = vmatpush3.msra.mxu1 (!%p592_p7), %v412_v54  ;;  %v593_v55 = vld [vmem:[%s944_s2] ss:$0 sm:$0xff] (!%p592_p7) }
  0x43   : > { %624 = vmatpush3.bf16.msra.mxu0 (!%p592_p7), %v623_v48  ;;  %v595_v60 = vld [vmem:[%s946_s4] ss:$0 sm:$0xff] (!%p592_p7) }
  0x44   : > { %256 = vadd.xlane.f32.xlu1 %v242_v5  ;;  %625 = vmatprep.subr.bf16.mxu0 (!%p592_p7), %v745_v47 }
  0x45   : > { %248 = vadd.xlane.f32.xlu0 %v238_v6  ;;  %v519_v6 = vsub.s32 (!%p592_p7), 1, %v867_v15 }
  0x47   : > { %627 = vmatpush3.bf16.msra.mxu0 (!%p592_p7), %v626_v51 }
  0x48   : > { %258 = vadd.xlane.f32.xlu1 %v243_v7 }
  0x49   : > { %250 = vadd.xlane.f32.xlu0 %v239_v8 }
  0xc9   : > { %v253_v11 = vpop.xlane.xlu1 %252 }
  0xca   : > { %v245_v12 = vpop.xlane.xlu0 %244  ;;  %v298_v29 = vrot.slane %v253_v11, %v272_v21 }
  0xcb   : > { %v273_v30 = vrot.slane %v245_v12, %v272_v21 }
  0xcd   : > { %v255_v16 = vpop.xlane.xlu1 %254 }
  0xce   : > { %v247_v17 = vpop.xlane.xlu0 %246  ;;  %v302_v24 = vrot.slane %v255_v16, %v277_v18 }
  0xcf   : > { %v278_v25 = vrot.slane %v247_v17, %v277_v18 }
  0xd0   : > { %v303_v33 = vsel %vm279_vm1, %v302_v24, %v298_v29 }
  0xd1   : > { %v257_v22 = vpop.xlane.xlu1 %256  ;;  %v280_v34 = vsel %vm279_vm1, %v278_v25, %v273_v30 }
  0xd2   : > { %v249_v23 = vpop.xlane.xlu0 %248  ;;  %v307_v27 = vrot.slane %v257_v22, %v284_v20 }
  0xd3   : > { %v285_v28 = vrot.slane %v249_v23, %v284_v20 }
  0xd4   : > { %v308_v37 = vsel %vm286_vm2, %v307_v27, %v303_v33 }
  0xd5   : > { %v259_v31 = vpop.xlane.xlu1 %258  ;;  %v287_v38 = vsel %vm286_vm2, %v285_v28, %v280_v34 }
  0xd6   : > { %v251_v32 = vpop.xlane.xlu0 %250  ;;  %v312_v35 = vrot.slane %v259_v31, %v291_v26 }
  0xd7   : > { %v292_v36 = vrot.slane %v251_v32, %v291_v26  ;;  %323 = sbr.rel (%p592_p7) target bundleno = 799 (0x31f), region = 52 }
  0xd8   : > { %v313_v40 = vsel %vm293_vm3, %v312_v35, %v308_v37 }
  0xd9   : > { %v294_v41 = vsel %vm293_vm3, %v292_v36, %v287_v38 }
  0xda   : > { %v315_v42 = vsel %vm314_vm4, %v313_v40, %v294_v41 }
  0xdb   : > { %v317_v43 = vadd.f32 %v315_v42, %v235_v39 }
  0xdd   : > { %319 = vst.msk [vmem:[#allocation2] sm:$0x3] %vm318_vm5, %v317_v43 }
  0xe4   : > { %v324_v52 = vld [vmem:[#allocation2] sm:$0x3] }
  0xe5   : > { %v325_v53 = vmul.f32 0.00390625, %v324_v52 }
  0xe7   : > { %615 = vmatmul.mubr.msk.f32.vlgmr.msra.gmra.mrb[0].mxu0 %vm337_vm7, %v325_v53 }
 0x1ba   : > { %v407_v56 = vpop.f32.mrb[0].mxu0 }
 0x1bb   : > { %v408_v57 = vadd.f32 %v593_v55, %v407_v56  ;;  %v616_v58 = vpop.f32.mrb[1].mxu0 }
 0x1bd   : > { %v411_v59 = vmax.f32 %v408_v57, 0.0 }
 0x1bf   : > { %620 = vmatmul.mubr.msk.f32.vlgmr.msra.gmra.mrb[0].mxu1 %vm420_vm8, %v411_v59 }
 0x292   : > { %v490_v61 = vpop.f32.mrb[0].mxu1 }
 0x293   : > { %v491_v62 = vadd.f32 %v595_v60, %v490_v61  ;;  %v621_v63 = vpop.f32.mrb[1].mxu1 }
 0x295   : > { %v494_v0 = vadd.f32 3.0, %v491_v62 }
 0x297   : > { %v495_v1 = vmax.f32 %v494_v0, 0.0 }
 0x299   : > { %v496_v2 = vmin.f32 %v495_v1, 6.0 }
 0x29b   : > { %v497_v4 = vmul.f32 0.16666667, %v496_v2 }
 0x29d   : > { %v501_v5 = vrot.slane %v497_v4, %v500_v3  ;;  %v520_v7 = vrot.slane %v497_v4, %v519_v6 }
 0x29f   : > { %511 = vbcast.lane.b32.xlu1 %v501_v5, 272  ;;  %503 = vbcast.lane.b32.xlu0 %v501_v5, 256 }
 0x2a3   : > { %515 = vbcast.lane.b32.xlu1 %v501_v5, 280  ;;  %507 = vbcast.lane.b32.xlu0 %v501_v5, 264 }
 0x2a7   : > { %526 = vbcast.lane.b32.xlu1 %v520_v7, 264  ;;  %522 = vbcast.lane.b32.xlu0 %v520_v7, 256 }
 0x2ab   : > { %534 = vbcast.lane.b32.xlu1 %v520_v7, 280  ;;  %530 = vbcast.lane.b32.xlu0 %v520_v7, 272 }
 0x311   : > { %v512_v8 = vpop.permute.xlu1 %511  ;;  %v504_v9 = vpop.permute.xlu0 %503 }
 0x312   : > { %539 = vst.msk [vmem:[%s947_s5 + $0x10] sm:$0xff] %vm536_vm9, %v512_v8  ;;  %537 = vst.msk [vmem:[%s947_s5] sm:$0xff] %vm536_vm9, %v504_v9 }
 0x315   : > { %v516_v10 = vpop.permute.xlu1 %515  ;;  %v508_v11 = vpop.permute.xlu0 %507 }
 0x316   : > { %540 = vst.msk [vmem:[%s947_s5 + $0x18] sm:$0xff] %vm536_vm9, %v516_v10  ;;  %538 = vst.msk [vmem:[%s947_s5 + $0x8] sm:$0xff] %vm536_vm9, %v508_v11 }
 0x319   : > { %v527_v12 = vpop.permute.xlu1 %526  ;;  %v523_v13 = vpop.permute.xlu0 %522 }
 0x31a   : > { %542 = vst.msk [vmem:[%s947_s5 + $0x28] sm:$0xff] %vm536_vm9, %v527_v12  ;;  %541 = vst.msk [vmem:[%s947_s5 + $0x20] sm:$0xff] %vm536_vm9, %v523_v13 }
 0x31d   : > { %v535_v14 = vpop.permute.xlu1 %534  ;;  %v531_v15 = vpop.permute.xlu0 %530 }
 0x31e   : > { %544 = vst.msk [vmem:[%s947_s5 + $0x38] sm:$0xff] %vm536_vm9, %v535_v14  ;;  %543 = vst.msk [vmem:[%s947_s5 + $0x30] sm:$0xff] %vm536_vm9, %v531_v15 }
 0x31f PF: > { %p15_p8 = scmp.ge.s32.totalorder %s800_s23, 4   ;;  %s950_s18 = smov %s730_s19 }
 0x320   : > { %s951_s19 = smov %s734_s20  ;;  %s952_s20 = smov %s810_s26 }
 0x321   : > { %s953_s21 = smov %s800_s23  ;;  %17 = sbr.rel (!%p15_p8) target bundleno = 3 (0x3), region = 84 }
 0x328   :  { %556 = vsyncpa [#allocation4], 1 }
 0x329   :  { %558 = vsyncpa [#allocation4 + $0x1], 1 }

</bundles_post_ra>
